<compile_context>
chip_gen: v5e
topology: v5e:2x2
jax: 0.10.0
libtpu: 0.0.40
codegen_flags: <defaults>
</compile_context>

<pallas_src>
import functools

import jax
import jax.numpy as jnp
from jax import lax
from jax.experimental import pallas as pl
from jax.experimental.pallas import tpu as pltpu


def _residual_block_kernel(x_ref, w_ref, b_ref, gamma_ref, beta_ref, o_ref,
                           *, tk, tn):
    j = pl.program_id(0)          # output-feature tile
    k = pl.program_id(1)          # contraction tile (innermost)

    # Fold the Linear bias into the accumulator init (this step writes the
    # whole block anyway, so the add is free).
    @pl.when(k == 0)
    def _init():
        o_ref[...] = jnp.broadcast_to(b_ref[...], o_ref.shape)

    # x stays fully VMEM-resident; slice the lane-aligned K tile in-kernel.
    k_start = pl.multiple_of(k * tk, tk)
    x_k = x_ref[:, pl.ds(k_start, tk)].astype(w_ref.dtype)

    # W is in its native [out, in] layout -> contract dim 1 of both operands
    # (== x @ W^T on the MXU), no transpose ever materializes.
    o_ref[...] += lax.dot_general(
        x_k, w_ref[...],
        dimension_numbers=(((1,), (1,)), ((), ())),
        preferred_element_type=jnp.float32)

    @pl.when(k == pl.num_programs(1) - 1)
    def _finalize():
        y = o_ref[...]                                        # [B, tn] = xW^T + b

        # Exact (erf-based) GELU — matches nn.GELU() default.
        inv_sqrt2 = jnp.float32(0.7071067811865476)
        g = 0.5 * y * (1.0 + lax.erf(y * inv_sqrt2))

        # BatchNorm1d (training mode): per-feature batch mean, biased variance.
        # Two-pass (centered) variance — avoids E[g^2]-E[g]^2 cancellation.
        inv_b = jnp.float32(1.0 / g.shape[0])
        mean = jnp.sum(g, axis=0, keepdims=True) * inv_b      # [1, tn]
        gc = g - mean
        var = jnp.sum(gc * gc, axis=0, keepdims=True) * inv_b
        inv_std = lax.rsqrt(var + jnp.float32(1e-5))          # EUP
        bn = gc * (inv_std * gamma_ref[...]) + beta_ref[...]

        # Residual add against the feature slice of the resident x.
        n_start = pl.multiple_of(j * tn, tn)
        o_ref[...] = x_ref[:, pl.ds(n_start, tn)] + bn


def _pick_tile(D, prefs):
    for t in prefs:
        if D % t == 0:
            return t
    return D


def residual_block(x, w, b, gamma, beta, *, tn=None, tk=None, cast_w_bf16=False):
    """ResidualBlock forward: x + BatchNorm1d(GELU(x @ w.T + b)) (train-mode BN).

    x: [B, D] f32; w: [D, D] f32 in PyTorch nn.Linear layout [out, in];
    b / gamma / beta: [1, D] f32.
    """
    B, D = x.shape
    assert w.shape == (D, D)

    if tn is None:
        tn = _pick_tile(D, (256, 128))   # 256-multiples feed the v6e/v7x 256^2 MXU
    if tk is None:
        tk = _pick_tile(D, (512, 256, 128))
    tn = min(tn, D)
    tk = min(tk, D)
    assert D % tn == 0 and D % tk == 0, "D must be divisible by the tile sizes"

    # Optional bf16 weight stream: halves W HBM traffic, accumulation stays f32.
    # Off by default — will not hold the 1e-4 tolerance vs the f32 reference.
    if cast_w_bf16:
        w = w.astype(jnp.bfloat16)

    b = b.reshape(1, D).astype(jnp.float32)
    gamma = gamma.reshape(1, D).astype(jnp.float32)
    beta = beta.reshape(1, D).astype(jnp.float32)

    grid = (D // tn, D // tk)   # (feature tiles, contraction tiles); K innermost.

    kernel = functools.partial(_residual_block_kernel, tk=tk, tn=tn)

    # VMEM budget: double-buffered W tiles + the resident x slab + the resident
    # out/accumulator tile + tiny per-feature params. Clamp to a sane scoped
    # range (v5e/v6e: 128 MiB physical, v7x: 64 MiB physical).
    itemsize_w = jnp.dtype(w.dtype).itemsize
    need = (2 * tn * tk * itemsize_w        # W (double-buffered)
            + 2 * B * D * 4                 # x (grid-invariant; conservative x2)
            + 2 * B * tn * 4                # out accumulator
            + 2 * 3 * tn * 4)               # bias / gamma / beta
    vmem_limit = min(max(int(need * 1.5) + (4 << 20), 32 << 20), 100 << 20)

    grid_spec = pltpu.PrefetchScalarGridSpec(
        num_scalar_prefetch=0,
        grid=grid,
        in_specs=[
            # x: full-array, grid-invariant block (BN needs the whole batch
            # anyway); K and N slices are taken in-kernel with pl.ds, so x is
            # read from HBM exactly once.
            pl.BlockSpec((B, D), lambda j, k: (0, 0)),
            # W tile in native [out, in] layout.
            pl.BlockSpec((tn, tk), lambda j, k: (j, k)),
            # bias / gamma / beta: lane-dense [1, tn] tiles (finalize only).
            pl.BlockSpec((1, tn), lambda j, k: (0, j)),
            pl.BlockSpec((1, tn), lambda j, k: (0, j)),
            pl.BlockSpec((1, tn), lambda j, k: (0, j)),
        ],
        # out block is k-invariant -> resident across K, used directly as the
        # f32 accumulator (no scratch, no final copy).
        out_specs=pl.BlockSpec((B, tn), lambda j, k: (0, j)),
    )

    return pl.pallas_call(
        kernel,
        out_shape=jax.ShapeDtypeStruct((B, D), jnp.float32),
        grid_spec=grid_spec,
        compiler_params=pltpu.CompilerParams(
            # Feature tiles are independent (BN stats are per-feature) ->
            # safe to shard across TensorCores; K is the reduction axis.
            dimension_semantics=("parallel", "arbitrary"),
            vmem_limit_bytes=vmem_limit,
        ),
    )(x, w, b, gamma, beta)


def residual_block_ref(x, w, b, gamma, beta):
    """Pure-JAX reference mirroring the PyTorch forward (train-mode BN)."""
    y = x @ w.T + b
    g = 0.5 * y * (1.0 + lax.erf(y / jnp.sqrt(2.0)))
    mean = jnp.mean(g, axis=0, keepdims=True)
    var = jnp.mean((g - mean) ** 2, axis=0, keepdims=True)
    bn = (g - mean) / jnp.sqrt(var + 1e-5) * gamma + beta
    return x + bn


if __name__ == "__main__":
    # Small but grid-exercising shapes.
    B, D = 8, 512

    key = jax.random.PRNGKey(0)
    kx, kw, kb = jax.random.split(key, 3)

    x = jax.random.normal(kx, (B, D), dtype=jnp.float32)

    # nn.Linear default init: U(-1/sqrt(in), 1/sqrt(in)) for weight and bias.
    bound = 1.0 / jnp.sqrt(jnp.float32(D))
    w = jax.random.uniform(kw, (D, D), jnp.float32, -bound, bound)
    b = jax.random.uniform(kb, (1, D), jnp.float32, -bound, bound)

    # nn.BatchNorm1d default affine params.
    gamma = jnp.ones((1, D), jnp.float32)
    beta = jnp.zeros((1, D), jnp.float32)

    ref = residual_block_ref(x, w, b, gamma, beta)

    # 1) Default (large) tiles: tn=256, tk=512 -> grid (2, 1).
    out = jax.block_until_ready(residual_block(x, w, b, gamma, beta))
    assert out.shape == (B, D)
    assert jnp.allclose(out, ref, atol=1e-4, rtol=1e-4), "mismatch (default tiles)"

    # 2) Small tiles: exercises multi-step K accumulation + the feature grid.
    out2 = jax.block_until_ready(
        residual_block(x, w, b, gamma, beta, tn=128, tk=128))
    assert jnp.allclose(out2, ref, atol=1e-4, rtol=1e-4), "mismatch (128 tiles)"

    print("KERNEL_OK")
</pallas_src>

<mosaic_0001>
module attributes {stable_mosaic.version = 11 : i64} {
  func.func @_residual_block_kernel(%arg0: i32, %arg1: i32, %arg2: memref<8x512xf32, #tpu.memory_space<vmem>>, %arg3: memref<256x512xf32, #tpu.memory_space<vmem>>, %arg4: memref<1x256xf32, #tpu.memory_space<vmem>>, %arg5: memref<1x256xf32, #tpu.memory_space<vmem>>, %arg6: memref<1x256xf32, #tpu.memory_space<vmem>>, %arg7: memref<8x256xf32, #tpu.memory_space<vmem>>) attributes {dimension_semantics = [#tpu.dimension_semantics<parallel>, #tpu.dimension_semantics<arbitrary>], iteration_bounds = array<i64: 2, 1>, scalar_prefetch = 0 : i64, scratch_operands = 0 : i64, tpu.core_type = #tpu.core_type<tc>, window_params = [{pipeline_mode = #tpu.pipeline_mode<synchronous>, transform_indices = @transform_0, window_bounds = array<i64: 8, 512>}, {transform_indices = @transform_1, window_bounds = array<i64: 256, 512>}, {transform_indices = @transform_2, window_bounds = array<i64: 1, 256>}, {transform_indices = @transform_3, window_bounds = array<i64: 1, 256>}, {transform_indices = @transform_4, window_bounds = array<i64: 1, 256>}, {transform_indices = @transform_5, window_bounds = array<i64: 8, 256>}]} {
    %c0_i32 = arith.constant 0 : i32
    %0 = arith.cmpi eq, %arg1, %c0_i32 : i32
    %1 = arith.extui %0 : i1 to i32
    %c0_i32_0 = arith.constant 0 : i32
    %2 = arith.cmpi ne, %1, %c0_i32_0 : i32
    scf.if %2 {
      %c0_9 = arith.constant 0 : index
      %c0_10 = arith.constant 0 : index
      %15 = vector.load %arg4[%c0_9, %c0_10] : memref<1x256xf32, #tpu.memory_space<vmem>>, vector<1x256xf32>
      %16 = vector.shape_cast %15 : vector<1x256xf32> to vector<1x256xf32>
      %17 = vector.broadcast %16 : vector<1x256xf32> to vector<8x256xf32>
      %c0_11 = arith.constant 0 : index
      %c0_12 = arith.constant 0 : index
      %18 = vector.load %arg7[%c0_11, %c0_12] : memref<8x256xf32, #tpu.memory_space<vmem>>, vector<8x256xf32>
      tpu.vector_store %arg7[%c0_11, %c0_12], %17 {strides = array<i32>} : memref<8x256xf32, #tpu.memory_space<vmem>>, vector<8x256xf32>,
    } else {
    }
    %c512_i32 = arith.constant 512 : i32
    %3 = arith.muli %arg1, %c512_i32 : i32
    %4 = tpu.assume_multiple %3, 512 : i32
    %c0 = arith.constant 0 : index
    %5 = arith.index_cast %4 : i32 to index
    %6 = vector.load %arg2[%c0, %5] : memref<8x512xf32, #tpu.memory_space<vmem>>, vector<8x512xf32>
    %c0_1 = arith.constant 0 : index
    %c0_2 = arith.constant 0 : index
    %7 = vector.load %arg7[%c0_1, %c0_2] : memref<8x256xf32, #tpu.memory_space<vmem>>, vector<8x256xf32>
    %c0_3 = arith.constant 0 : index
    %c0_4 = arith.constant 0 : index
    %8 = vector.load %arg3[%c0_3, %c0_4] : memref<256x512xf32, #tpu.memory_space<vmem>>, vector<256x512xf32>
    %cst = arith.constant dense<0.000000e+00> : vector<8x256xf32>
    %9 = tpu.matmul %6, %8, %cst {dimension_numbers = #tpu.dot_dimension_numbers<[1], [1], [0], [0], [0, 0, 1, 0], [], []>} : vector<8x512xf32>, vector<256x512xf32>, vector<8x256xf32> -> vector<8x256xf32>
    %10 = arith.addf %7, %9 : vector<8x256xf32>
    %c0_5 = arith.constant 0 : index
    %c0_6 = arith.constant 0 : index
    %11 = vector.load %arg7[%c0_5, %c0_6] : memref<8x256xf32, #tpu.memory_space<vmem>>, vector<8x256xf32>
    tpu.vector_store %arg7[%c0_5, %c0_6], %10 {strides = array<i32>} : memref<8x256xf32, #tpu.memory_space<vmem>>, vector<8x256xf32>,
    %c0_i32_7 = arith.constant 0 : i32
    %12 = arith.cmpi eq, %arg1, %c0_i32_7 : i32
    %13 = arith.extui %12 : i1 to i32
    %c0_i32_8 = arith.constant 0 : i32
    %14 = arith.cmpi ne, %13, %c0_i32_8 : i32
    scf.if %14 {
      %c0_9 = arith.constant 0 : index
      %c0_10 = arith.constant 0 : index
      %15 = vector.load %arg7[%c0_9, %c0_10] : memref<8x256xf32, #tpu.memory_space<vmem>>, vector<8x256xf32>
      %cst_11 = arith.constant 5.000000e-01 : f32
      %16 = vector.broadcast %cst_11 : f32 to vector<8x256xf32>
      %17 = arith.mulf %16, %15 : vector<8x256xf32>
      %cst_12 = arith.constant 0.707106769 : f32
      %18 = vector.broadcast %cst_12 : f32 to vector<8x256xf32>
      %19 = arith.mulf %15, %18 : vector<8x256xf32>
      %20 = math.erf %19 : vector<8x256xf32>
      %cst_13 = arith.constant 1.000000e+00 : f32
      %21 = vector.broadcast %cst_13 : f32 to vector<8x256xf32>
      %22 = arith.addf %21, %20 : vector<8x256xf32>
      %23 = arith.mulf %17, %22 : vector<8x256xf32>
      %cst_14 = arith.constant dense<0.000000e+00> : vector<256xf32>
      %24 = vector.multi_reduction <add>, %23, %cst_14 [0] : vector<8x256xf32> to vector<256xf32>
      %25 = vector.shape_cast %24 : vector<256xf32> to vector<1x256xf32>
      %cst_15 = arith.constant 1.250000e-01 : f32
      %26 = vector.broadcast %cst_15 : f32 to vector<1x256xf32>
      %27 = arith.mulf %25, %26 : vector<1x256xf32>
      %28 = vector.broadcast %27 : vector<1x256xf32> to vector<8x256xf32>
      %29 = arith.subf %23, %28 : vector<8x256xf32>
      %30 = arith.mulf %29, %29 : vector<8x256xf32>
      %cst_16 = arith.constant dense<0.000000e+00> : vector<256xf32>
      %31 = vector.multi_reduction <add>, %30, %cst_16 [0] : vector<8x256xf32> to vector<256xf32>
      %32 = vector.shape_cast %31 : vector<256xf32> to vector<1x256xf32>
      %cst_17 = arith.constant 1.250000e-01 : f32
      %33 = vector.broadcast %cst_17 : f32 to vector<1x256xf32>
      %34 = arith.mulf %32, %33 : vector<1x256xf32>
      %cst_18 = arith.constant 9.99999974E-6 : f32
      %35 = vector.broadcast %cst_18 : f32 to vector<1x256xf32>
      %36 = arith.addf %34, %35 : vector<1x256xf32>
      %37 = math.rsqrt %36 : vector<1x256xf32>
      %c0_19 = arith.constant 0 : index
      %c0_20 = arith.constant 0 : index
      %38 = vector.load %arg5[%c0_19, %c0_20] : memref<1x256xf32, #tpu.memory_space<vmem>>, vector<1x256xf32>
      %39 = arith.mulf %37, %38 : vector<1x256xf32>
      %40 = vector.broadcast %39 : vector<1x256xf32> to vector<8x256xf32>
      %41 = arith.mulf %29, %40 : vector<8x256xf32>
      %c0_21 = arith.constant 0 : index
      %c0_22 = arith.constant 0 : index
      %42 = vector.load %arg6[%c0_21, %c0_22] : memref<1x256xf32, #tpu.memory_space<vmem>>, vector<1x256xf32>
      %43 = vector.broadcast %42 : vector<1x256xf32> to vector<8x256xf32>
      %44 = arith.addf %41, %43 : vector<8x256xf32>
      %c256_i32 = arith.constant 256 : i32
      %45 = arith.muli %arg0, %c256_i32 : i32
      %46 = tpu.assume_multiple %45, 256 : i32
      %c0_23 = arith.constant 0 : index
      %47 = arith.index_cast %46 : i32 to index
      %48 = vector.load %arg2[%c0_23, %47] : memref<8x512xf32, #tpu.memory_space<vmem>>, vector<8x256xf32>
      %49 = arith.addf %48, %44 : vector<8x256xf32>
      %c0_24 = arith.constant 0 : index
      %c0_25 = arith.constant 0 : index
      %50 = vector.load %arg7[%c0_24, %c0_25] : memref<8x256xf32, #tpu.memory_space<vmem>>, vector<8x256xf32>
      tpu.vector_store %arg7[%c0_24, %c0_25], %49 {strides = array<i32>} : memref<8x256xf32, #tpu.memory_space<vmem>>, vector<8x256xf32>,
    } else {
    }
    return
  }
  func.func @transform_0(%arg0: i32, %arg1: i32) -> (i32, i32) {
    %c0_i32 = arith.constant 0 : i32
    %c0_i32_0 = arith.constant 0 : i32
    %c0_i32_1 = arith.constant 0 : i32
    return %c0_i32, %c0_i32_0 : i32, i32
  }
  func.func @transform_1(%arg0: i32, %arg1: i32) -> (i32, i32) {
    %c0_i32 = arith.constant 0 : i32
    return %arg0, %arg1 : i32, i32
  }
  func.func @transform_2(%arg0: i32, %arg1: i32) -> (i32, i32) {
    %c0_i32 = arith.constant 0 : i32
    %c0_i32_0 = arith.constant 0 : i32
    return %c0_i32, %arg0 : i32, i32
  }
  func.func @transform_3(%arg0: i32, %arg1: i32) -> (i32, i32) {
    %c0_i32 = arith.constant 0 : i32
    %c0_i32_0 = arith.constant 0 : i32
    return %c0_i32, %arg0 : i32, i32
  }
  func.func @transform_4(%arg0: i32, %arg1: i32) -> (i32, i32) {
    %c0_i32 = arith.constant 0 : i32
    %c0_i32_0 = arith.constant 0 : i32
    return %c0_i32, %arg0 : i32, i32
  }
  func.func @transform_5(%arg0: i32, %arg1: i32) -> (i32, i32) {
    %c0_i32 = arith.constant 0 : i32
    %c0_i32_0 = arith.constant 0 : i32
    return %c0_i32, %arg0 : i32, i32
  }
}

</mosaic_0001>

<bundles_post_ra>
// kernel: tpu_custom_call.1
= control target key start
LH: loop header
LB: loop body
LE: loop exit
PB: predicated region body
PF: predicated region fallthrough
CT: control target
= control target key end

     0   :  { %s1851_s0 = inlined_call_operand.hbm [shape: f32[8,512], index: 0, kind: input, shape index: {}]   ;;  %s1852_s1 = inlined_call_operand.hbm [shape: f32[512,512], index: 1, kind: input, shape index: {}]   ;;  %s1853_s2 = inlined_call_operand.hbm [shape: f32[1,512], index: 2, kind: input, shape index: {}]   ;;  %s1854_s3 = inlined_call_operand.hbm [shape: f32[1,512], index: 3, kind: input, shape index: {}]   ;;  %s1855_s4 = inlined_call_operand.hbm [shape: f32[1,512], index: 4, kind: input, shape index: {}]   ;;  %s1856_s5 = inlined_call_operand.hbm [shape: f32[8,512], index: 5, kind: output, shape index: {}]  }
   0x1   :  { %1859 = sst [smem:[#allocation19_spill]] %s1851_s0 }
   0x2   :  { %1860 = sst [smem:[#allocation20_spill]] %s1852_s1 }
   0x3   :  { %1861 = sst [smem:[#allocation21_spill]] %s1854_s3 }
   0x4   :  { %10 = vsyncpa [#allocation3], 0 }
   0x5   :  { %11 = vsyncpa [#allocation6], 0 }
   0x6   :  { %13 = vsyncpa [#allocation6 + $0x1], 0 }
   0x7   :  { %14 = vsyncpa [#allocation9], 0 }
   0x8   :  { %16 = vsyncpa [#allocation9 + $0x1], 0 }
   0x9   :  { %17 = vsyncpa [#allocation4], 0 }
   0xa   :  { %19 = vsyncpa [#allocation4 + $0x1], 0  ;;  %s1471_s18 = smov 0   ;;  %s1473_s19 = smov 0  }
   0xb   :  { %s1475_s20 = smov 0   ;;  %s1477_s21 = smov 0  }
   0xc   :  { %s1479_s22 = smov 0   ;;  %s1481_s23 = smov 0  }
   0xd LB: > { %1862 = sst [smem:[#allocation16_spill]] %s1432_s22  ;;  %s37_s24 = sadd.s32 1, %s1432_s22  ;;  %s1436_s23 = sphi %s1481_s23, %s25_s23   ;;  %s1432_s22 = sphi %s1479_s22, %s1876_s22   ;;  %s1428_s21 = sphi %s1477_s21, %s1875_s21   ;;  %s1424_s20 = sphi %s1475_s20, %s1879_s20   ;;  %s1420_s19 = sphi %s1473_s19, %s1878_s19   ;;  %s1416_s18 = sphi %s1471_s18, %s1877_s18  }
   0xe   : > { %s67_s25 = sadd.s32 1, %s1424_s20  ;;  %p39_p0 = scmp.ge.s32.totalorder %s37_s24, 2 }
   0xf   : > { %p74_p1 = scmp.ne.s32.totalorder %s1424_s20, %s1420_s19  ;;  %p75_p2 = scmp.eq.s32.totalorder %s1436_s23, 0 }
  0x10   : > { %p1068_p3 = scmp.ge.s32.totalorder %s1436_s23, 2  ;;  %s1881_s24 = smov (%p39_p0, %s37_s24), 0 }
  0x11   : > { %1863 = sst [smem:[#allocation17_spill]] %s1881_s24  ;;  %p1512_p4 = por %p75_p2, %p74_p1 }
  0x12   : > { %p1134_p5 = scmp.lt.s32.totalorder %s1436_s23, 2  ;;  %s62_s27 = ssub.s32 %s1432_s22, %s1881_s24 }
  0x13   : > { %s220_s28 = sand.u32 1, %s1436_s23   ;;  %p65_p6 = scmp.eq.s32.totalorder %s62_s27, 0 }
  0x14   : > { %s222_s29 = sand.u32 1, %s1424_s20   ;;  %s1096_s30 = sshll.u32 %s1432_s22, 10 }
  0x15   : > { %s1523_s6 = scalar_select %p65_p6, %s1424_s20, %s67_s25  }
  0x16   : > { %s1069_s7 = sshll.u32 %s222_s29, 10  ;;  %s1866_s1 = sld [smem:[#allocation20_spill]] }
  0x17   : > { %1865 = sst [smem:[#allocation18_spill]] %s1523_s6  ;;  %s224_s12 = scalar_lea.vmem [#allocation5], %s1069_s7 }
  0x18   : > { %s235_s13 = sshll.u32 %s224_s12, 4  ;;  %p1532_p7 = pnand %p1134_p5, %p1512_p4  ;;  %s236_s13 = int_to_ptr.vmem [resolvable:$true] %s235_s13 }
  0x19   : > { %s1536_s15 = sshll.u32 %s222_s29, 1  ;;  %s1538_s16 = scalar_lea.sflag [#allocation6], %s220_s28 }
  0x1a   : > { %s1438_s17 = smov 512   ;;  %s1439_s25 = smov 32  }
  0x1b   : > { %s1544_s26 = sshll.u32 %s1432_s22, 1  ;;  %s1868_s3 = sld [smem:[#allocation21_spill]] }
  0x1c   : > { %s232_s10 = scalar_lea.hbm %s1866_s1, %s1096_s30  ;;  %s268_s8 = scalar_lea.vmem [#allocation8], %s1536_s15 }
  0x1d   : > { %s233_s11 = sshll.u32 %s232_s10, 4  ;;  %s276_s9 = sshll.u32 %s268_s8, 4  ;;  %s234_s11 = int_to_ptr.hbm [resolvable:$true] %s233_s11  ;;  %s277_s9 = int_to_ptr.vmem [resolvable:$true] %s276_s9 }
  0x1e   : > { %1119 = dma.hbm_to_vmem [thread:$0]  (!%p1532_p7), %s234_s11, 16384, %s236_s13, %s1538_s16, %s1438_s17, %s1438_s17, %s1439_s25  }
  0x1f   : > { %s1551_s10 = scalar_lea.sflag [#allocation9], %s220_s28  ;;  %s1557_s11 = sadd.s32 4294967295, %s1436_s23  }
  0x20   : > { %s1065_s12 = sadd.s32 4294967294, %s1436_s23   ;;  %p80_p8 = scmp.ne.s32.totalorder %s1420_s19, %s1416_s18 }
  0x21   : > { %s272_s7 = scalar_lea.hbm %s1868_s3, %s1544_s26  ;;  %p81_p9 = scmp.eq.s32.totalorder %s1557_s11, 0 }
  0x22   : > { %s274_s29 = sshll.u32 %s272_s7, 4  ;;  %p182_p10 = scmp.eq.s32.totalorder %s1557_s11, 1  ;;  %s275_s29 = int_to_ptr.hbm [resolvable:$true] %s274_s29 }
  0x23   : > { %1125 = dma.hbm_to_vmem [thread:$0]  (!%p1532_p7), %s275_s29, 32, %s277_s9, %s1551_s10  }
  0x24   : > { %p188_p11 = scmp.eq.s32.totalorder %s1065_s12, 1  ;;  %p1566_p12 = por %p81_p9, %p80_p8 }
  0x25   : > { %p1066_p13 = scmp.ge.s32.totalorder %s1436_s23, 1  ;;  %p1574_p0 = por %p182_p10, %p74_p1 }
  0x26   : > { %p1578_p2 = por %p188_p11, %p80_p8  ;;  %p195_p4 = scmp.lt.s32.totalorder %s1436_s23, 3 }
  0x27   : > { %s1872_s0 = sld [smem:[#allocation19_spill]]  ;;  %s1440_s29 = smov [#allocation2]  }
  0x28   : > { %p1586_p5 = pnand %p1066_p13, %p195_p4  ;;  %s209_s8 = sshll.u32 %s1440_s29, 4  ;;  %s210_s8 = int_to_ptr.vmem [resolvable:$true] %s209_s8 }
  0x29   : > { %s253_s25 = scalar_lea.hbm %s1853_s2, %s1544_s26  ;;  %s249_s27 = scalar_lea.vmem [#allocation7], %s1536_s15 }
  0x2a   : > { %p1112_p1 = pneg %p1586_p5  ;;  %s255_s1 = sshll.u32 %s253_s25, 4  ;;  %s256_s1 = int_to_ptr.hbm [resolvable:$true] %s255_s1 }
  0x2b   : > { %s291_s24 = scalar_lea.hbm %s1855_s4, %s1544_s26  ;;  %s287_s22 = scalar_lea.vmem [#allocation10], %s1536_s15 }
  0x2c   : > { %p1113_p6 = pnand %p1112_p1, %p81_p9  ;;  %s295_s6 = sshll.u32 %s287_s22, 4  ;;  %s296_s6 = int_to_ptr.vmem [resolvable:$true] %s295_s6 }
  0x2d   : > { %s207_s30 = sshll.u32 %s1872_s0, 4  ;;  %s257_s0 = sshll.u32 %s249_s27, 4  ;;  %s208_s30 = int_to_ptr.hbm [resolvable:$true] %s207_s30  ;;  %s258_s0 = int_to_ptr.vmem [resolvable:$true] %s257_s0 }
  0x2e   : > { %1115 = dma.hbm_to_vmem [thread:$0]  (!%p1113_p6), %s208_s30, 512, %s210_s8, [#allocation3]  }
  0x2f   : > { %1122 = dma.hbm_to_vmem [thread:$0]  (!%p1532_p7), %s256_s1, 32, %s258_s0, %s1538_s16  }
  0x30   : > { %s293_s9 = sshll.u32 %s291_s24, 4  ;;  %304 = sbr.rel (%p1586_p5) target bundleno = 443 (0x1bb), region = 40  ;;  %s294_s9 = int_to_ptr.hbm [resolvable:$true] %s293_s9 }
  0x31   : > { %1128 = dma.hbm_to_vmem [thread:$0]  (!%p1532_p7), %s294_s9, 32, %s296_s6, %s1551_s10  }
  0x35   : > { %1399 = dma.done.wait (%p81_p9), [#allocation3], 512  }
  0x36   : > { %1401 = vsyncadd (%p81_p9), [#allocation3], 4294966784  ;;  %s311_s0 = sand.u32 1, %s1557_s11   ;;  %s1618_s1 = sand.u32 1, %s1420_s19  }
  0x37   : > { %s1081_s3 = sshll.u32 %s1618_s1, 10  ;;  %s312_s22 = scalar_lea.sflag [#allocation6], %s311_s0 }
  0x38   : > { %s1621_s24 = scalar_lea.vmem [#allocation5], %s1081_s3 }
  0x39   : > { %1403 = dma.done.wait (%p1566_p12), %s312_s22, 16416  }
  0x3a   : > { %1405 = vsyncadd (%p1566_p12), %s312_s22, 4294950880  ;;  %s1628_s6 = sshll.u32 %s1618_s1, 1  ;;  %s332_s15 = scalar_lea.sflag [#allocation9], %s311_s0 }
  0x3b   : > { %s325_s14 = scalar_lea.vmem [#allocation7], %s1628_s6  ;;  %s335_s16 = scalar_lea.vmem [#allocation8], %s1628_s6 }
  0x3c   : > { %1407 = dma.done.wait (%p1566_p12), %s332_s15, 64  }
  0x3d   : > { %1409 = vsyncadd (%p1566_p12), %s332_s15, 4294967232  ;;  %v479_v0 = vld [vmem:[%s1621_s24 + $0x1f0] sm:$0xff]  ;;  %v480_v1 = vld [vmem:[%s1621_s24 + $0x1f8] sm:$0xff]  ;;  %s1088_s26 = sshll.u32 %s1428_s21, 8  ;;  %s345_s11 = scalar_lea.vmem [#allocation10], %s1628_s6 }
  0x3e   : > { %v477_v2 = vld [vmem:[%s1621_s24 + $0x1e0] sm:$0xff]  ;;  %585 = vmatpush.xpose.msra.mxu2 %v479_v0  ;;  %605 = vmatpush.xpose.msra.mxu3 %v480_v1  ;;  %v478_v3 = vld [vmem:[%s1621_s24 + $0x1e8] sm:$0xff]  ;;  %v475_v4 = vld [vmem:[%s1621_s24 + $0x1d0] sm:$0xff]  ;;  %s877_s10 = sshra.s32 %s1088_s26, 7  ;;  %s1085_s30 = sshll.u32 %s1618_s1, 4 }
  0x3f   : > { %545 = vmatpush.xpose.msra.mxu0 %v477_v2  ;;  %565 = vmatpush.xpose.msra.mxu1 %v478_v3  ;;  %v476_v5 = vld [vmem:[%s1621_s24 + $0x1d8] sm:$0xff]  ;;  %v473_v6 = vld [vmem:[%s1621_s24 + $0x1c0] sm:$0xff]  ;;  %v474_v7 = vld [vmem:[%s1621_s24 + $0x1c8] sm:$0xff]  ;;  %s1089_s28 = sshll.u32 %s877_s10, 3  ;;  %s1806_s8 = scalar_lea.vmem [#allocation11], %s1085_s30 }
  0x40   : > { %v471_v8 = vld [vmem:[%s1621_s24 + $0x1b0] sm:$0xff]  ;;  %v472_v9 = vld [vmem:[%s1621_s24 + $0x1b8] sm:$0xff]  ;;  %v469_v10 = vld [vmem:[%s1621_s24 + $0x1a0] sm:$0xff]  ;;  %s1803_s7 = scalar_lea.vmem [#allocation2], %s1089_s28  ;;  %s1097_s12 = sshll.u32 %s1428_s21, 4 }
  0x41   : > { %v470_v11 = vld [vmem:[%s1621_s24 + $0x1a8] sm:$0xff]  ;;  %v467_v12 = vld [vmem:[%s1621_s24 + $0x190] sm:$0xff]  ;;  %v468_v13 = vld [vmem:[%s1621_s24 + $0x198] sm:$0xff]  ;;  %s899_s29 = scalar_lea.hbm %s1856_s5, %s1097_s12  ;;  %s901_s9 = sshll.u32 %s1806_s8, 4  ;;  %s902_s9 = int_to_ptr.vmem [resolvable:$true] %s901_s9 }
  0x42   : > { %586 = vmatpush.xpose.msra.mxu2 %v475_v4  ;;  %606 = vmatpush.xpose.msra.mxu3 %v476_v5  ;;  %v465_v14 = vld [vmem:[%s1621_s24 + $0x180] sm:$0xff]  ;;  %v466_v15 = vld [vmem:[%s1621_s24 + $0x188] sm:$0xff]  ;;  %v463_v16 = vld [vmem:[%s1621_s24 + $0x170] sm:$0xff]  ;;  %s903_s0 = sshll.u32 %s899_s29, 4  ;;  %s888_s3 = scalar_lea.sflag [#allocation4], %s1618_s1  ;;  %s904_s0 = int_to_ptr.hbm [resolvable:$true] %s903_s0 }
  0x43   : > { %546 = vmatpush.xpose.msra.mxu0 %v473_v6  ;;  %566 = vmatpush.xpose.msra.mxu1 %v474_v7  ;;  %v464_v17 = vld [vmem:[%s1621_s24 + $0x178] sm:$0xff]  ;;  %v461_v18 = vld [vmem:[%s1621_s24 + $0x160] sm:$0xff]  ;;  %v462_v19 = vld [vmem:[%s1621_s24 + $0x168] sm:$0xff]  ;;  %s1360_s22 = sshra.s32 %s904_s0, 4  ;;  %s1361_s22 = int_to_ptr.hbm [resolvable:$true] %s1360_s22 }
  0x44   : > { %v459_v20 = vld [vmem:[%s1621_s24 + $0x150] sm:$0xff]  ;;  %v460_v21 = vld [vmem:[%s1621_s24 + $0x158] sm:$0xff]  ;;  %v457_v22 = vld [vmem:[%s1621_s24 + $0x140] sm:$0xff]  ;;  %s1362_s21 = scalar_lea.hbm %s1361_s22, 16  ;;  %p1367_p10 = scmp.lt.s32.totalorder %s1361_s22, %s1856_s5 }
  0x45   : > { %v458_v23 = vld [vmem:[%s1621_s24 + $0x148] sm:$0xff]  ;;  %v455_v24 = vld [vmem:[%s1621_s24 + $0x130] sm:$0xff]  ;;  %v456_v25 = vld [vmem:[%s1621_s24 + $0x138] sm:$0xff]  ;;  %p1363_p7 = scmp.ne.s32.totalorder %s1361_s22, %s1362_s21 }
  0x46   : > { %587 = vmatpush.xpose.msra.mxu2 %v471_v8  ;;  %607 = vmatpush.xpose.msra.mxu3 %v472_v9  ;;  %v453_v26 = vld [vmem:[%s1621_s24 + $0x120] sm:$0xff]  ;;  %v454_v27 = vld [vmem:[%s1621_s24 + $0x128] sm:$0xff]  ;;  %v451_v28 = vld [vmem:[%s1621_s24 + $0x110] sm:$0xff] }
  0x47   : > { %547 = vmatpush.xpose.msra.mxu0 %v469_v10  ;;  %567 = vmatpush.xpose.msra.mxu1 %v470_v11  ;;  %v452_v29 = vld [vmem:[%s1621_s24 + $0x118] sm:$0xff]  ;;  %v449_v30 = vld [vmem:[%s1621_s24 + $0x100] sm:$0xff]  ;;  %v450_v31 = vld [vmem:[%s1621_s24 + $0x108] sm:$0xff]  ;;  %p1364_p8 = pnand %p1363_p7, %p1574_p0 }
  0x48   : > { %v447_v32 = vld [vmem:[%s1621_s24 + $0xf0] sm:$0xff]  ;;  %v448_v33 = vld [vmem:[%s1621_s24 + $0xf8] sm:$0xff]  ;;  %v445_v34 = vld [vmem:[%s1621_s24 + $0xe0] sm:$0xff] }
  0x49   : > { %v446_v35 = vld [vmem:[%s1621_s24 + $0xe8] sm:$0xff]  ;;  %v443_v36 = vld [vmem:[%s1621_s24 + $0xd0] sm:$0xff]  ;;  %v444_v37 = vld [vmem:[%s1621_s24 + $0xd8] sm:$0xff]  ;;  %p1365_p9 = pneg %p1364_p8 }
  0x4a   : > { %588 = vmatpush.xpose.msra.mxu2 %v467_v12  ;;  %608 = vmatpush.xpose.msra.mxu3 %v468_v13  ;;  %v441_v38 = vld [vmem:[%s1621_s24 + $0xc0] sm:$0xff]  ;;  %v442_v39 = vld [vmem:[%s1621_s24 + $0xc8] sm:$0xff]  ;;  %v439_v40 = vld [vmem:[%s1621_s24 + $0xb0] sm:$0xff] }
  0x4b   : > { %548 = vmatpush.xpose.msra.mxu0 %v465_v14  ;;  %568 = vmatpush.xpose.msra.mxu1 %v466_v15  ;;  %v440_v41 = vld [vmem:[%s1621_s24 + $0xb8] sm:$0xff]  ;;  %v437_v42 = vld [vmem:[%s1621_s24 + $0xa0] sm:$0xff]  ;;  %v438_v43 = vld [vmem:[%s1621_s24 + $0xa8] sm:$0xff] }
  0x4c   : > { %v435_v44 = vld [vmem:[%s1621_s24 + $0x90] sm:$0xff]  ;;  %v436_v45 = vld [vmem:[%s1621_s24 + $0x98] sm:$0xff]  ;;  %v433_v46 = vld [vmem:[%s1621_s24 + $0x80] sm:$0xff] }
  0x4d   : > { %v434_v47 = vld [vmem:[%s1621_s24 + $0x88] sm:$0xff]  ;;  %v431_v48 = vld [vmem:[%s1621_s24 + $0x70] sm:$0xff]  ;;  %v432_v49 = vld [vmem:[%s1621_s24 + $0x78] sm:$0xff] }
  0x4e   : > { %589 = vmatpush.xpose.msra.mxu2 %v463_v16  ;;  %609 = vmatpush.xpose.msra.mxu3 %v464_v17  ;;  %v429_v50 = vld [vmem:[%s1621_s24 + $0x60] sm:$0xff]  ;;  %v430_v51 = vld [vmem:[%s1621_s24 + $0x68] sm:$0xff]  ;;  %v427_v52 = vld [vmem:[%s1621_s24 + $0x50] sm:$0xff] }
  0x4f   : > { %549 = vmatpush.xpose.msra.mxu0 %v461_v18  ;;  %569 = vmatpush.xpose.msra.mxu1 %v462_v19  ;;  %v428_v53 = vld [vmem:[%s1621_s24 + $0x58] sm:$0xff]  ;;  %v425_v54 = vld [vmem:[%s1621_s24 + $0x40] sm:$0xff]  ;;  %v426_v55 = vld [vmem:[%s1621_s24 + $0x48] sm:$0xff] }
  0x50   : > { %v423_v56 = vld [vmem:[%s1621_s24 + $0x30] sm:$0xff]  ;;  %v424_v57 = vld [vmem:[%s1621_s24 + $0x38] sm:$0xff]  ;;  %v421_v58 = vld [vmem:[%s1621_s24 + $0x20] sm:$0xff] }
  0x51   : > { %v422_v59 = vld [vmem:[%s1621_s24 + $0x28] sm:$0xff]  ;;  %v419_v60 = vld [vmem:[%s1621_s24 + $0x10] sm:$0xff]  ;;  %v420_v61 = vld [vmem:[%s1621_s24 + $0x18] sm:$0xff] }
  0x52   : > { %590 = vmatpush.xpose.msra.mxu2 %v459_v20  ;;  %610 = vmatpush.xpose.msra.mxu3 %v460_v21  ;;  %v543_v62 = vld [vmem:[%s1621_s24 + $0x3f0] sm:$0xff]  ;;  %v544_v63 = vld [vmem:[%s1621_s24 + $0x3f8] sm:$0xff]  ;;  %v417_v0 = vld [vmem:[%s1621_s24] sm:$0xff] }
  0x53   : > { %550 = vmatpush.xpose.msra.mxu0 %v457_v22  ;;  %570 = vmatpush.xpose.msra.mxu1 %v458_v23  ;;  %v418_v1 = vld [vmem:[%s1621_s24 + $0x8] sm:$0xff]  ;;  %v1702_v2 = vld [vmem:[#allocation2 + $0x10] sm:$0xff]  ;;  %v1704_v3 = vld [vmem:[#allocation2 + $0x18] sm:$0xff] }
  0x54   : > { %v541_v4 = vld [vmem:[%s1621_s24 + $0x3e0] sm:$0xff]  ;;  %v542_v5 = vld [vmem:[%s1621_s24 + $0x3e8] sm:$0xff]  ;;  %v539_v6 = vld [vmem:[%s1621_s24 + $0x3d0] sm:$0xff] }
  0x55   : > { %v1709_v7 = vld [vmem:[#allocation2] sm:$0xff]  ;;  %v1713_v8 = vld [vmem:[#allocation2 + $0x8] sm:$0xff]  ;;  %v540_v9 = vld [vmem:[%s1621_s24 + $0x3d8] sm:$0xff] }
  0x56   : > { %591 = vmatpush.xpose.msra.mxu2 %v455_v24  ;;  %611 = vmatpush.xpose.msra.mxu3 %v456_v25  ;;  %v537_v10 = vld [vmem:[%s1621_s24 + $0x3c0] sm:$0xff]  ;;  %v538_v11 = vld [vmem:[%s1621_s24 + $0x3c8] sm:$0xff]  ;;  %v535_v12 = vld [vmem:[%s1621_s24 + $0x3b0] sm:$0xff] }
  0x57   : > { %551 = vmatpush.xpose.msra.mxu0 %v453_v26  ;;  %571 = vmatpush.xpose.msra.mxu1 %v454_v27  ;;  %v536_v13 = vld [vmem:[%s1621_s24 + $0x3b8] sm:$0xff]  ;;  %v533_v14 = vld [vmem:[%s1621_s24 + $0x3a0] sm:$0xff]  ;;  %v534_v15 = vld [vmem:[%s1621_s24 + $0x3a8] sm:$0xff] }
  0x58   : > { %v531_v16 = vld [vmem:[%s1621_s24 + $0x390] sm:$0xff]  ;;  %v532_v17 = vld [vmem:[%s1621_s24 + $0x398] sm:$0xff]  ;;  %v529_v18 = vld [vmem:[%s1621_s24 + $0x380] sm:$0xff] }
  0x59   : > { %v530_v19 = vld [vmem:[%s1621_s24 + $0x388] sm:$0xff]  ;;  %v527_v20 = vld [vmem:[%s1621_s24 + $0x370] sm:$0xff]  ;;  %v528_v21 = vld [vmem:[%s1621_s24 + $0x378] sm:$0xff] }
  0x5a   : > { %592 = vmatpush.xpose.msra.mxu2 %v451_v28  ;;  %612 = vmatpush.xpose.msra.mxu3 %v452_v29  ;;  %v525_v22 = vld [vmem:[%s1621_s24 + $0x360] sm:$0xff]  ;;  %v526_v23 = vld [vmem:[%s1621_s24 + $0x368] sm:$0xff]  ;;  %v523_v24 = vld [vmem:[%s1621_s24 + $0x350] sm:$0xff] }
  0x5b   : > { %552 = vmatpush.xpose.msra.mxu0 %v449_v30  ;;  %572 = vmatpush.xpose.msra.mxu1 %v450_v31  ;;  %v524_v25 = vld [vmem:[%s1621_s24 + $0x358] sm:$0xff]  ;;  %v521_v26 = vld [vmem:[%s1621_s24 + $0x340] sm:$0xff]  ;;  %v522_v27 = vld [vmem:[%s1621_s24 + $0x348] sm:$0xff] }
  0x5c   : > { %v519_v28 = vld [vmem:[%s1621_s24 + $0x330] sm:$0xff]  ;;  %v520_v29 = vld [vmem:[%s1621_s24 + $0x338] sm:$0xff]  ;;  %v517_v30 = vld [vmem:[%s1621_s24 + $0x320] sm:$0xff] }
  0x5d   : > { %v518_v31 = vld [vmem:[%s1621_s24 + $0x328] sm:$0xff] }
  0x5e   : > { %593 = vmatpush.xpose.msra.mxu2 %v447_v32  ;;  %613 = vmatpush.xpose.msra.mxu3 %v448_v33  ;;  %v515_v32 = vld [vmem:[%s1621_s24 + $0x310] sm:$0xff]  ;;  %v516_v33 = vld [vmem:[%s1621_s24 + $0x318] sm:$0xff] }
  0x5f   : > { %553 = vmatpush.xpose.msra.mxu0 %v445_v34  ;;  %573 = vmatpush.xpose.msra.mxu1 %v446_v35  ;;  %v513_v34 = vld [vmem:[%s1621_s24 + $0x300] sm:$0xff]  ;;  %v514_v35 = vld [vmem:[%s1621_s24 + $0x308] sm:$0xff] }
  0x62   : > { %594 = vmatpush.xpose.msra.mxu2 %v443_v36  ;;  %614 = vmatpush.xpose.msra.mxu3 %v444_v37  ;;  %v511_v36 = vld [vmem:[%s1621_s24 + $0x2f0] sm:$0xff]  ;;  %v512_v37 = vld [vmem:[%s1621_s24 + $0x2f8] sm:$0xff] }
  0x63   : > { %554 = vmatpush.xpose.msra.mxu0 %v441_v38  ;;  %574 = vmatpush.xpose.msra.mxu1 %v442_v39  ;;  %v509_v38 = vld [vmem:[%s1621_s24 + $0x2e0] sm:$0xff]  ;;  %v510_v39 = vld [vmem:[%s1621_s24 + $0x2e8] sm:$0xff] }
  0x66   : > { %595 = vmatpush.xpose.msra.mxu2 %v439_v40  ;;  %615 = vmatpush.xpose.msra.mxu3 %v440_v41  ;;  %v507_v40 = vld [vmem:[%s1621_s24 + $0x2d0] sm:$0xff]  ;;  %v508_v41 = vld [vmem:[%s1621_s24 + $0x2d8] sm:$0xff] }
  0x67   : > { %555 = vmatpush.xpose.msra.mxu0 %v437_v42  ;;  %575 = vmatpush.xpose.msra.mxu1 %v438_v43  ;;  %v505_v42 = vld [vmem:[%s1621_s24 + $0x2c0] sm:$0xff]  ;;  %v506_v43 = vld [vmem:[%s1621_s24 + $0x2c8] sm:$0xff] }
  0x6a   : > { %596 = vmatpush.xpose.msra.mxu2 %v435_v44  ;;  %616 = vmatpush.xpose.msra.mxu3 %v436_v45  ;;  %v503_v44 = vld [vmem:[%s1621_s24 + $0x2b0] sm:$0xff]  ;;  %v504_v45 = vld [vmem:[%s1621_s24 + $0x2b8] sm:$0xff] }
  0x6b   : > { %556 = vmatpush.xpose.msra.mxu0 %v433_v46  ;;  %576 = vmatpush.xpose.msra.mxu1 %v434_v47  ;;  %v501_v46 = vld [vmem:[%s1621_s24 + $0x2a0] sm:$0xff]  ;;  %v502_v47 = vld [vmem:[%s1621_s24 + $0x2a8] sm:$0xff] }
  0x6e   : > { %597 = vmatpush.xpose.msra.mxu2 %v431_v48  ;;  %617 = vmatpush.xpose.msra.mxu3 %v432_v49  ;;  %v499_v48 = vld [vmem:[%s1621_s24 + $0x290] sm:$0xff]  ;;  %v500_v49 = vld [vmem:[%s1621_s24 + $0x298] sm:$0xff] }
  0x6f   : > { %557 = vmatpush.xpose.msra.mxu0 %v429_v50  ;;  %577 = vmatpush.xpose.msra.mxu1 %v430_v51  ;;  %v497_v50 = vld [vmem:[%s1621_s24 + $0x280] sm:$0xff]  ;;  %v498_v51 = vld [vmem:[%s1621_s24 + $0x288] sm:$0xff] }
  0x72   : > { %598 = vmatpush.xpose.msra.mxu2 %v427_v52  ;;  %618 = vmatpush.xpose.msra.mxu3 %v428_v53  ;;  %v495_v52 = vld [vmem:[%s1621_s24 + $0x270] sm:$0xff]  ;;  %v496_v53 = vld [vmem:[%s1621_s24 + $0x278] sm:$0xff] }
  0x73   : > { %558 = vmatpush.xpose.msra.mxu0 %v425_v54  ;;  %578 = vmatpush.xpose.msra.mxu1 %v426_v55  ;;  %v493_v54 = vld [vmem:[%s1621_s24 + $0x260] sm:$0xff]  ;;  %v494_v55 = vld [vmem:[%s1621_s24 + $0x268] sm:$0xff] }
  0x76   : > { %599 = vmatpush.xpose.msra.mxu2 %v423_v56  ;;  %619 = vmatpush.xpose.msra.mxu3 %v424_v57  ;;  %v491_v56 = vld [vmem:[%s1621_s24 + $0x250] sm:$0xff]  ;;  %v492_v57 = vld [vmem:[%s1621_s24 + $0x258] sm:$0xff] }
  0x77   : > { %559 = vmatpush.xpose.msra.mxu0 %v421_v58  ;;  %579 = vmatpush.xpose.msra.mxu1 %v422_v59  ;;  %v489_v58 = vld [vmem:[%s1621_s24 + $0x240] sm:$0xff]  ;;  %v490_v59 = vld [vmem:[%s1621_s24 + $0x248] sm:$0xff] }
  0x7a   : > { %600 = vmatpush.xpose.msra.mxu2 %v419_v60  ;;  %620 = vmatpush.xpose.msra.mxu3 %v420_v61  ;;  %v487_v60 = vld [vmem:[%s1621_s24 + $0x230] sm:$0xff]  ;;  %v488_v61 = vld [vmem:[%s1621_s24 + $0x238] sm:$0xff] }
  0x7b   : > { %560 = vmatpush.xpose.msra.mxu0 %v417_v0  ;;  %580 = vmatpush.xpose.msra.mxu1 %v418_v1  ;;  %v483_v0 = vld [vmem:[%s1621_s24 + $0x210] sm:$0xff]  ;;  %v484_v1 = vld [vmem:[%s1621_s24 + $0x218] sm:$0xff] }
  0x7d   : > { %601 = vmatmul.f32.vlgmr.msra.gmra.mxu2 %v1702_v2  ;;  %621 = vmatmul.f32.vlgmr.msra.gmra.mxu3 %v1704_v3 }
  0x7e   : > { %665 = vmatpush.xpose.msrb.mxu2 %v543_v62  ;;  %685 = vmatpush.xpose.msrb.mxu3 %v544_v63  ;;  %v485_v62 = vld [vmem:[%s1621_s24 + $0x220] sm:$0xff]  ;;  %v486_v63 = vld [vmem:[%s1621_s24 + $0x228] sm:$0xff] }
  0x7f   : > { %625 = vmatpush.xpose.msrb.mxu0 %v541_v4  ;;  %645 = vmatpush.xpose.msrb.mxu1 %v542_v5  ;;  %v481_v4 = vld [vmem:[%s1621_s24 + $0x200] sm:$0xff]  ;;  %v482_v5 = vld [vmem:[%s1621_s24 + $0x208] sm:$0xff] }
  0x80   : > { %561 = vmatmul.f32.vlgmr.msra.gmra.mxu0 %v1709_v7  ;;  %581 = vmatmul.f32.vlgmr.msra.gmra.mxu1 %v1713_v8 }
  0x82   : > { %666 = vmatpush.xpose.msrb.mxu2 %v539_v6  ;;  %686 = vmatpush.xpose.msrb.mxu3 %v540_v9 }
  0x83   : > { %626 = vmatpush.xpose.msrb.mxu0 %v537_v10  ;;  %646 = vmatpush.xpose.msrb.mxu1 %v538_v11  ;;  %v1782_v11 = vld [vmem:[%s325_s14] sm:$0x3]  ;;  %s1366_s14 = scalar_lea.hbm %s1856_s5, 32 }
  0x84   : > { %p1368_p11 = scmp.lt.s32.totalorder %s1366_s14, %s1362_s21 }
  0x86   : > { %667 = vmatpush.xpose.msrb.mxu2 %v535_v12  ;;  %687 = vmatpush.xpose.msrb.mxu3 %v536_v13  ;;  %p1369_p12 = por %p1368_p11, %p1367_p10 }
  0x87   : > { %627 = vmatpush.xpose.msrb.mxu0 %v533_v14  ;;  %647 = vmatpush.xpose.msrb.mxu1 %v534_v15  ;;  %v400_v15 = vperm.slane %v1782_v11, 0 }
  0x88   : > { %p1370_p13 = pnand %p1369_p12, %p1365_p9 }
  0x8a   : > { %668 = vmatpush.xpose.msrb.mxu2 %v531_v16  ;;  %688 = vmatpush.xpose.msrb.mxu3 %v532_v17 }
  0x8b   : > { %628 = vmatpush.xpose.msrb.mxu0 %v529_v18  ;;  %648 = vmatpush.xpose.msrb.mxu1 %v530_v19 }
  0x8e   : > { %669 = vmatpush.xpose.msrb.mxu2 %v527_v20  ;;  %689 = vmatpush.xpose.msrb.mxu3 %v528_v21 }
  0x8f   : > { %629 = vmatpush.xpose.msrb.mxu0 %v525_v22  ;;  %649 = vmatpush.xpose.msrb.mxu1 %v526_v23 }
  0x92   : > { %670 = vmatpush.xpose.msrb.mxu2 %v523_v24  ;;  %690 = vmatpush.xpose.msrb.mxu3 %v524_v25 }
  0x93   : > { %630 = vmatpush.xpose.msrb.mxu0 %v521_v26  ;;  %650 = vmatpush.xpose.msrb.mxu1 %v522_v27 }
  0x96   : > { %671 = vmatpush.xpose.msrb.mxu2 %v519_v28  ;;  %691 = vmatpush.xpose.msrb.mxu3 %v520_v29 }
  0x97   : > { %631 = vmatpush.xpose.msrb.mxu0 %v517_v30  ;;  %651 = vmatpush.xpose.msrb.mxu1 %v518_v31 }
  0x9a   : > { %672 = vmatpush.xpose.msrb.mxu2 %v515_v32  ;;  %692 = vmatpush.xpose.msrb.mxu3 %v516_v33 }
  0x9b   : > { %632 = vmatpush.xpose.msrb.mxu0 %v513_v34  ;;  %652 = vmatpush.xpose.msrb.mxu1 %v514_v35 }
  0x9e   : > { %673 = vmatpush.xpose.msrb.mxu2 %v511_v36  ;;  %693 = vmatpush.xpose.msrb.mxu3 %v512_v37 }
  0x9f   : > { %633 = vmatpush.xpose.msrb.mxu0 %v509_v38  ;;  %653 = vmatpush.xpose.msrb.mxu1 %v510_v39 }
  0xa2   : > { %674 = vmatpush.xpose.msrb.mxu2 %v507_v40  ;;  %694 = vmatpush.xpose.msrb.mxu3 %v508_v41 }
  0xa3   : > { %634 = vmatpush.xpose.msrb.mxu0 %v505_v42  ;;  %654 = vmatpush.xpose.msrb.mxu1 %v506_v43 }
  0xa6   : > { %675 = vmatpush.xpose.msrb.mxu2 %v503_v44  ;;  %695 = vmatpush.xpose.msrb.mxu3 %v504_v45 }
  0xa7   : > { %635 = vmatpush.xpose.msrb.mxu0 %v501_v46  ;;  %655 = vmatpush.xpose.msrb.mxu1 %v502_v47 }
  0xaa   : > { %676 = vmatpush.xpose.msrb.mxu2 %v499_v48  ;;  %696 = vmatpush.xpose.msrb.mxu3 %v500_v49 }
  0xab   : > { %636 = vmatpush.xpose.msrb.mxu0 %v497_v50  ;;  %656 = vmatpush.xpose.msrb.mxu1 %v498_v51 }
  0xae   : > { %677 = vmatpush.xpose.msrb.mxu2 %v495_v52  ;;  %697 = vmatpush.xpose.msrb.mxu3 %v496_v53 }
  0xaf   : > { %637 = vmatpush.xpose.msrb.mxu0 %v493_v54  ;;  %657 = vmatpush.xpose.msrb.mxu1 %v494_v55 }
  0xb2   : > { %678 = vmatpush.xpose.msrb.mxu2 %v491_v56  ;;  %698 = vmatpush.xpose.msrb.mxu3 %v492_v57 }
  0xb3   : > { %638 = vmatpush.xpose.msrb.mxu0 %v489_v58  ;;  %658 = vmatpush.xpose.msrb.mxu1 %v490_v59 }
  0xb6   : > { %679 = vmatpush.xpose.msrb.mxu2 %v487_v60  ;;  %699 = vmatpush.xpose.msrb.mxu3 %v488_v61  ;;  %v401_v60 = vperm.slane %v1782_v11, 1 }
  0xb7   : > { %639 = vmatpush.xpose.msrb.mxu0 %v485_v62  ;;  %659 = vmatpush.xpose.msrb.mxu1 %v486_v63 }
  0xba   : > { %680 = vmatpush.xpose.msrb.mxu2 %v483_v0  ;;  %700 = vmatpush.xpose.msrb.mxu3 %v484_v1 }
  0xbb   : > { %640 = vmatpush.xpose.msrb.mxu0 %v481_v4  ;;  %660 = vmatpush.xpose.msrb.mxu1 %v482_v5 }
  0xbd   : > { %681 = vmatmul.f32.vlgmr.msrb.gmra.mxu2 %v1702_v2  ;;  %701 = vmatmul.f32.vlgmr.msrb.gmra.mxu3 %v1704_v3 }
  0xbe   : > { %641 = vmatmul.f32.vlgmr.msrb.gmra.mxu0 %v1709_v7  ;;  %661 = vmatmul.f32.vlgmr.msrb.gmra.mxu1 %v1713_v8 }
  0xfd   : > { %v562_v6 = vpop.f32.mrf.mxu0  ;;  %v582_v9 = vpop.f32.mrf.mxu1 }
  0xfe   : > { %v583_v10 = vadd.f32 %v582_v9, %v562_v6 }
 0x100   : > { %v602_v12 = vpop.f32.mrf.mxu2  ;;  %v622_v13 = vpop.f32.mrf.mxu3 }
 0x101   : > { %v603_v14 = vadd.f32 %v602_v12, %v583_v10 }
 0x103   : > { %v623_v2 = vadd.f32 %v622_v13, %v603_v14 }
 0x105   : > { %v705_v16 = vadd.f32 %v623_v2, %v400_v15 }
 0x107   : > { %v716_v17 = vmul.f32 0.70710677, %v705_v16  ;;  %v714_v49 = vmul.f32 0.5, %v705_v16 }
 0x109   : > { %v718_v18 = vmul.f32 %v716_v17, %v716_v17 }
 0x10b   : > { %v719_v3 = vmin.f32 %v718_v18, 16.0 }
 0x10d   : > { %v720_v19 = vmul.f32 2.1237322e-06, %v719_v3  ;;  %v731_v7 = vmul.f32 3.8918573e-05, %v719_v3 }
 0x10f   : > { %v721_v20 = vadd.f32 0.00028619796, %v720_v19  ;;  %v732_v8 = vadd.f32 0.001143296, %v731_v7 }
 0x111   : > { %v722_v21 = vmul.f32 %v721_v20, %v719_v3  ;;  %v733_v22 = vmul.f32 %v732_v8, %v719_v3 }
 0x113   : > { %v723_v23 = vadd.f32 0.0036580483, %v722_v21  ;;  %v734_v24 = vadd.f32 0.014752088, %v733_v22 }
 0x115   : > { %v724_v25 = vmul.f32 %v723_v23, %v719_v3  ;;  %v735_v26 = vmul.f32 %v734_v24, %v719_v3 }
 0x117   : > { %v736_v27 = vadd.f32 0.112945676, %v735_v26  ;;  %v725_v28 = vadd.f32 0.05243302, %v724_v25 }
 0x119   : > { %v737_v29 = vmul.f32 %v736_v27, %v719_v3  ;;  %v726_v31 = vmul.f32 %v725_v28, %v719_v3 }
 0x11b   : > { %v738_v30 = vadd.f32 0.4994258, %v737_v29  ;;  %v727_v34 = vadd.f32 0.18741608, %v726_v31 }
 0x11d   : > { %v739_v32 = vmul.f32 %v738_v30, %v719_v3  ;;  %v728_v35 = vmul.f32 %v727_v34, %v719_v3 }
 0x11f   : > { %v740_v33 = vadd.f32 1.0, %v739_v32  ;;  %v729_v38 = vadd.f32 1.1283791, %v728_v35 }
 0x121   : > { %1188 = vrcp.f32 %v740_v33  ;;  %v752_v39 = vand.u32 2147483648, %v740_v33  ;;  %vm746_vm0 = vweird.f32 %v740_v33  ;;  %v750_v41 = vand.u32 2147483647, %v740_v33 }
 0x122   : > { %v730_v44 = vmul.f32 %v729_v38, %v716_v17 }
 0x123   : > { %v753_v43 = vor.u32 1.1754944e-38, %v752_v39  ;;  %vm751_vm3 = vcmp.eq.f32.partialorder %v750_v41, 8.507059e+37 }
 0x127   : > { %v1189_v36 = vpop.eup %1188 }
 0x128   : > { %v742_v37 = vmul.f32 %v1189_v36, %v740_v33  ;;  %vm747_vm1 = vweird.f32 %v1189_v36 }
 0x129   : > { %vm748_vm2 = vmor %vm746_vm0, %vm747_vm1 }
 0x12a   : > { %v743_v40 = vsub.f32 1.0, %v742_v37 }
 0x12c   : > { %v744_v42 = vmul.f32 %v1189_v36, %v743_v40 }
 0x12e   : > { %v745_v45 = vadd.f32 %v1189_v36, %v744_v42 }
 0x130   : > { %v749_v46 = vsel %vm748_vm2, %v1189_v36, %v745_v45 }
 0x131   : > { %v754_v47 = vsel %vm751_vm3, %v753_v43, %v749_v46 }
 0x132   : > { %v755_v48 = vmul.f32 %v754_v47, %v730_v44  ;;  %v1795_v44 = vld [vmem:[%s335_s16] sm:$0x3] }
 0x134   : > { %v1086_v50 = vclamps-f32 %v755_v48, 1.0 }
 0x136   : > { %v798_v51 = vadd.f32 1.0, %v1086_v50  ;;  %v858_v50 = vperm.slane %v1795_v44, 0 }
 0x138   : > { %v800_v52 = vmul.f32 %v798_v51, %v714_v49 }
 0x13a   : > { %v802_v54 = vrot.slane %v800_v52, 4 }
 0x13b   : > { %v642_v53 = vpop.f32.mrf.mxu0  ;;  %v662_v55 = vpop.f32.mrf.mxu1 }
 0x13c   : > { %v663_v56 = vadd.f32 %v662_v55, %v642_v53  ;;  %v803_v57 = vadd.f32 %v802_v54, %v800_v52 }
 0x13e   : > { %v804_v62 = vrot.slane %v803_v57, 2 }
 0x140   : > { %v682_v58 = vpop.f32.mrf.mxu2  ;;  %v702_v61 = vpop.f32.mrf.mxu3  ;;  %v805_v0 = vadd.f32 %v804_v62, %v803_v57  ;;  %v868_v57 = vld [vmem:[%s345_s11] sm:$0x3] }
 0x141   : > { %v683_v59 = vadd.f32 %v682_v58, %v663_v56  ;;  %v870_v62 = vperm.slane %v868_v57, 0 }
 0x142   : > { %v806_v4 = vrot.slane %v805_v0, 1 }
 0x143   : > { %v703_v63 = vadd.f32 %v702_v61, %v683_v59 }
 0x144   : > { %v807_v6 = vadd.f32 %v806_v4, %v805_v0 }
 0x145   : > { %v1786_v1 = vadd.f32 %v703_v63, %v401_v60 }
 0x146   : > { %v814_v10 = vmul.f32 0.125, %v807_v6 }
 0x147   : > { %v717_v5 = vmul.f32 0.70710677, %v1786_v1  ;;  %v715_v4 = vmul.f32 0.5, %v1786_v1 }
 0x148   : > { %v1789_v13 = vsub.f32 %v800_v52, %v814_v10 }
 0x149   : > { %v758_v9 = vmul.f32 %v717_v5, %v717_v5 }
 0x14a   : > { %v818_v11 = vmul.f32 %v1789_v13, %v1789_v13 }
 0x14b   : > { %v759_v12 = vmin.f32 %v758_v9, 16.0 }
 0x14c   : > { %v820_v17 = vrot.slane %v818_v11, 4 }
 0x14d   : > { %v760_v14 = vmul.f32 2.1237322e-06, %v759_v12  ;;  %v771_v15 = vmul.f32 3.8918573e-05, %v759_v12 }
 0x14e   : > { %v821_v19 = vadd.f32 %v820_v17, %v818_v11 }
 0x14f   : > { %v761_v2 = vadd.f32 0.00028619796, %v760_v14  ;;  %v772_v16 = vadd.f32 0.001143296, %v771_v15 }
 0x150   : > { %v822_v8 = vrot.slane %v821_v19, 2 }
 0x151   : > { %v762_v18 = vmul.f32 %v761_v2, %v759_v12  ;;  %v773_v3 = vmul.f32 %v772_v16, %v759_v12 }
 0x152   : > { %v823_v22 = vadd.f32 %v822_v8, %v821_v19 }
 0x153   : > { %v763_v7 = vadd.f32 0.0036580483, %v762_v18  ;;  %v774_v20 = vadd.f32 0.014752088, %v773_v3 }
 0x154   : > { %v824_v25 = vrot.slane %v823_v22, 1 }
 0x155   : > { %v775_v21 = vmul.f32 %v774_v20, %v759_v12  ;;  %v764_v23 = vmul.f32 %v763_v7, %v759_v12 }
 0x156   : > { %v825_v27 = vadd.f32 %v824_v25, %v823_v22 }
 0x157   : > { %v776_v24 = vadd.f32 0.112945676, %v775_v21  ;;  %v765_v28 = vadd.f32 0.05243302, %v764_v23 }
 0x158   : > { %v832_v30 = vmul.f32 0.125, %v825_v27 }
 0x159   : > { %v777_v26 = vmul.f32 %v776_v24, %v759_v12  ;;  %v766_v33 = vmul.f32 %v765_v28, %v759_v12 }
 0x15a   : > { %v834_v32 = vadd.f32 1e-05, %v832_v30 }
 0x15b   : > { %v778_v29 = vadd.f32 0.4994258, %v777_v26  ;;  %v767_v35 = vadd.f32 0.18741608, %v766_v33 }
 0x15c   : > { %1190 = vrsqrt.f32 %v834_v32  ;;  %vm842_vm6 = vweird.f32 %v834_v32 }
 0x15d   : > { %v779_v31 = vmul.f32 %v778_v29, %v759_v12  ;;  %v768_v39 = vmul.f32 %v767_v35, %v759_v12  ;;  %v859_v29 = vperm.slane %v1795_v44, 1 }
 0x15f   : > { %v780_v34 = vadd.f32 1.0, %v779_v31  ;;  %v769_v45 = vadd.f32 1.1283791, %v768_v39 }
 0x161   : > { %1192 = vrcp.f32 %v780_v34  ;;  %v792_v46 = vand.u32 2147483648, %v780_v34  ;;  %v790_v48 = vand.u32 2147483647, %v780_v34  ;;  %vm786_vm7 = vweird.f32 %v780_v34 }
 0x162   : > { %v1191_v36 = vpop.eup %1190  ;;  %v770_v54 = vmul.f32 %v769_v45, %v717_v5  ;;  %v881_v5 = vld [vmem:[%s1803_s7] sm:$0xff] }
 0x163   : > { %v837_v37 = vmul.f32 %v1191_v36, %v834_v32  ;;  %vm843_vm4 = vweird.f32 %v1191_v36  ;;  %v793_v53 = vor.u32 1.1754944e-38, %v792_v46  ;;  %vm791_vm10 = vcmp.eq.f32.partialorder %v790_v48, 8.507059e+37 }
 0x164   : > { %vm844_vm8 = vmor %vm842_vm6, %vm843_vm4 }
 0x165   : > { %v838_v41 = vmul.f32 %v1191_v36, %v837_v37 }
 0x167   : > { %v1193_v38 = vpop.eup %1192  ;;  %v839_v43 = vmul.f32 0.5, %v838_v41 }
 0x168   : > { %v782_v40 = vmul.f32 %v1193_v38, %v780_v34  ;;  %vm787_vm5 = vweird.f32 %v1193_v38  ;;  %v871_v34 = vperm.slane %v868_v57, 1 }
 0x169   : > { %v840_v49 = vsub.f32 1.5, %v839_v43  ;;  %vm788_vm9 = vmor %vm786_vm7, %vm787_vm5 }
 0x16a   : > { %v783_v42 = vsub.f32 1.0, %v782_v40 }
 0x16b   : > { %v841_v52 = vmul.f32 %v1191_v36, %v840_v49 }
 0x16c   : > { %v784_v47 = vmul.f32 %v1193_v38, %v783_v42 }
 0x16d   : > { %v845_v56 = vsel %vm844_vm8, %v1191_v36, %v841_v52  ;;  %v882_v36 = vld [vmem:[%s1803_s7 + $0x8] sm:$0xff] }
 0x16e   : > { %v785_v51 = vadd.f32 %v1193_v38, %v784_v47  ;;  %v862_v59 = vmul.f32 %v858_v50, %v845_v56 }
 0x170   : > { %v789_v55 = vsel %vm788_vm9, %v1193_v38, %v785_v51  ;;  %v864_v61 = vperm.slane %v862_v59, 0 }
 0x171   : > { %v794_v58 = vsel %vm791_vm10, %v793_v53, %v789_v55 }
 0x172   : > { %v795_v60 = vmul.f32 %v794_v58, %v770_v54  ;;  %v866_v0 = vmul.f32 %v864_v61, %v1789_v13 }
 0x174   : > { %v1087_v63 = vclamps-f32 %v795_v60, 1.0  ;;  %v874_v9 = vadd.f32 %v870_v62, %v866_v0 }
 0x176   : > { %v799_v6 = vadd.f32 1.0, %v1087_v63  ;;  %v883_v12 = vadd.f32 %v881_v5, %v874_v9 }
 0x178   : > { %v801_v10 = vmul.f32 %v799_v6, %v715_v4  ;;  %885 = vst [vmem:[%s1806_s8] sm:$0xff] %v883_v12 }
 0x17a   : > { %v808_v14 = vrot.slane %v801_v10, 4 }
 0x17c   : > { %v809_v15 = vadd.f32 %v808_v14, %v801_v10 }
 0x17e   : > { %v810_v11 = vrot.slane %v809_v15, 2 }
 0x180   : > { %v811_v2 = vadd.f32 %v810_v11, %v809_v15 }
 0x182   : > { %v812_v16 = vrot.slane %v811_v2, 1 }
 0x184   : > { %v813_v13 = vadd.f32 %v812_v16, %v811_v2 }
 0x186   : > { %v815_v17 = vmul.f32 0.125, %v813_v13 }
 0x188   : > { %v817_v1 = vsub.f32 %v801_v10, %v815_v17 }
 0x18a   : > { %v819_v18 = vmul.f32 %v817_v1, %v817_v1 }
 0x18c   : > { %v826_v3 = vrot.slane %v819_v18, 4 }
 0x18e   : > { %v827_v19 = vadd.f32 %v826_v3, %v819_v18 }
 0x190   : > { %v828_v7 = vrot.slane %v827_v19, 2 }
 0x192   : > { %v829_v20 = vadd.f32 %v828_v7, %v827_v19 }
 0x194   : > { %v830_v8 = vrot.slane %v829_v20, 1 }
 0x196   : > { %v831_v21 = vadd.f32 %v830_v8, %v829_v20 }
 0x198   : > { %v833_v22 = vmul.f32 0.125, %v831_v21 }
 0x19a   : > { %v835_v23 = vadd.f32 1e-05, %v833_v22 }
 0x19c   : > { %1194 = vrsqrt.f32 %v835_v23  ;;  %vm852_vm12 = vweird.f32 %v835_v23 }
 0x1a2   : > { %v1195_v24 = vpop.eup %1194 }
 0x1a3   : > { %v847_v25 = vmul.f32 %v1195_v24, %v835_v23  ;;  %vm853_vm11 = vweird.f32 %v1195_v24 }
 0x1a4   : > { %vm854_vm13 = vmor %vm852_vm12, %vm853_vm11 }
 0x1a5   : > { %v848_v26 = vmul.f32 %v1195_v24, %v847_v25 }
 0x1a7   : > { %v849_v27 = vmul.f32 0.5, %v848_v26 }
 0x1a9   : > { %v850_v28 = vsub.f32 1.5, %v849_v27 }
 0x1ab   : > { %v851_v30 = vmul.f32 %v1195_v24, %v850_v28 }
 0x1ad   : > { %v855_v31 = vsel %vm854_vm13, %v1195_v24, %v851_v30 }
 0x1ae   : > { %v863_v32 = vmul.f32 %v859_v29, %v855_v31 }
 0x1b0   : > { %v865_v33 = vperm.slane %v863_v32, 0 }
 0x1b2   : > { %v867_v35 = vmul.f32 %v865_v33, %v817_v1 }
 0x1b4   : > { %v875_v37 = vadd.f32 %v871_v34, %v867_v35 }
 0x1b6   : > { %v884_v38 = vadd.f32 %v882_v36, %v875_v37 }
 0x1b8   : > { %886 = vst [vmem:[%s1806_s8 + $0x8] sm:$0xff] %v884_v38 }
 0x1b9   : > { %1373 = shalt.err (!%p1370_p13)
}
 0x1ba   : > { %1110 = dma.vmem_to_hbm [thread:$0]  (%p1574_p0), %s902_s9, 256, %s904_s0, %s888_s3  }
 0x1bb PF: > { %s915_s1 = sand.u32 1, %s1416_s18   ;;  %p1130_p4 = pnand %p1068_p3, %p1578_p2 }
 0x1bc   : > { %s916_s26 = scalar_lea.sflag [#allocation4], %s915_s1 }
 0x1bd   : > { %p1131_p5 = pneg %p1130_p4 }
 0x1bf   : > { %1411 = dma.done.wait (%p1131_p5), %s916_s26, 256  }
 0x1c0   : > { %1413 = vsyncadd (%p1131_p5), %s916_s26, 4294967040  ;;  %s25_s23 = sadd.s32 1, %s1436_s23   ;;  %s1874_s10 = sld [smem:[#allocation18_spill]] }
 0x1c1   : > { %p22_p1 = scmp.ge.s32.totalorder %s25_s23, 4   ;;  %s1875_s21 = sld [smem:[#allocation16_spill]] }
 0x1c2   : > { %s1876_s22 = sld [smem:[#allocation17_spill]]  ;;  %s1877_s18 = smov %s1420_s19 }
 0x1c3   : > { %s1878_s19 = smov %s1424_s20  ;;  %24 = sbr.rel (!%p22_p1) target bundleno = 13 (0xd), region = 135 }
 0x1c6   : > { %s1879_s20 = smov %s1874_s10 }
 0x1c8   :  { %922 = vsyncpa [#allocation3], 1 }
 0x1c9   :  { %924 = vsyncpa [#allocation3 + $0x1], 1 }
 0x1ca   :  { %925 = vsyncpa [#allocation6], 1 }
 0x1cb   :  { %927 = vsyncpa [#allocation6 + $0x1], 1 }
 0x1cc   :  { %928 = vsyncpa [#allocation9], 1 }
 0x1cd   :  { %930 = vsyncpa [#allocation9 + $0x1], 1 }
 0x1ce   :  { %931 = vsyncpa [#allocation4], 1 }
 0x1cf   :  { %933 = vsyncpa [#allocation4 + $0x1], 1 }

</bundles_post_ra>
